<compile_context>
chip_gen: v7x
topology: tpu7x:2x2x1
jax: 0.10.0
libtpu: 0.0.40
codegen_flags: <defaults>
</compile_context>

<pallas_src>
import functools

import jax
import jax.numpy as jnp
from jax.experimental import pallas as pl
from jax.experimental.pallas import tpu as pltpu

IN_FEATURES = 28 * 28   # 784
HIDDEN = 128
OUT_FEATURES = 10
PADDED_OUT = 128        # lane-dense output width (cols 10..127 are exact zeros)

_SINGLE_BLOCK_MAX_B = 256   # tiny batches: one full-array VMEM block, no grid


def _mlp_kernel(x_ref, w1_ref, w2_ref, o_ref):
    # x_ref:  (TB, 784)  f32 or bf16  VMEM
    # w1_ref: (784, 128) bf16         VMEM  (fc1 weight, pre-transposed)
    # w2_ref: (128, 128) bf16         VMEM  (fc2 weight, pre-transposed + zero-padded)
    # o_ref:  (TB, 128)  f32          VMEM
    x = x_ref[...].astype(jnp.bfloat16)                               # no-op if bf16 in
    h = jnp.dot(x, w1_ref[...], preferred_element_type=jnp.float32)   # (TB,128) f32
    h = jnp.maximum(h, 0.0)                                           # ReLU
    o_ref[...] = jnp.dot(h.astype(jnp.bfloat16), w2_ref[...],
                         preferred_element_type=jnp.float32).astype(o_ref.dtype)


def prepare_weights(w1, w2):
    """One-time weight prep (parameter-load time, NOT per forward call).

    w1: (128, 784) PyTorch-layout fc1 weight.
    w2: (10, 128)  PyTorch-layout fc2 weight.
    Returns (w1_t, w2_t_pad): (784,128) bf16 and (128,128) bf16 (zero-padded).
    """
    w1_t = jnp.asarray(w1, jnp.float32).T.astype(jnp.bfloat16)            # (784, 128)
    w2_t = jnp.asarray(w2, jnp.float32).T                                 # (128, 10)
    w2_t = jnp.pad(w2_t, ((0, 0), (0, PADDED_OUT - OUT_FEATURES)))        # (128, 128)
    return w1_t, w2_t.astype(jnp.bfloat16)


def _vmem_capacity_bytes():
    try:
        return int(pltpu.get_tpu_info().vmem_capacity_bytes)
    except Exception:
        return 64 * 1024 * 1024   # conservative fallback (v7x per-TensorCore VMEM)


def _per_row_vmem_bytes(x_itemsize):
    # Live VMEM per batch row inside one grid step:
    #   x tile (double-buffered) + in-kernel bf16 copy of x
    #   + h (f32) + h (bf16) + f32 output tile (double-buffered)
    return (IN_FEATURES * x_itemsize * 2
            + IN_FEATURES * 2
            + HIDDEN * (4 + 2)
            + PADDED_OUT * 4 * 2)


def _pick_batch_tile(B, x_itemsize):
    cap = _vmem_capacity_bytes()
    per_row = _per_row_vmem_bytes(x_itemsize)
    budget = cap // 2                       # headroom: weights, compiler slack, spills
    tile = budget // per_row
    tile = min(tile, 4096)                  # v7x-friendly cap; diminishing returns beyond
    tile = min(tile, max(8, B // 2))        # >= 2 grid steps so v7x megacore splits the batch
    tile = max(8, (tile // 8) * 8)          # sublane-aligned block rows
    return int(tile)


def _cost_estimate(B, x_itemsize, out_itemsize):
    flops = 2 * B * (IN_FEATURES * HIDDEN + HIDDEN * PADDED_OUT)
    bytes_accessed = (B * (IN_FEATURES * x_itemsize + PADDED_OUT * out_itemsize)
                      + IN_FEATURES * HIDDEN * 2 + HIDDEN * PADDED_OUT * 2)
    return pl.CostEstimate(flops=flops, transcendentals=0,
                           bytes_accessed=bytes_accessed)


@functools.partial(jax.jit, static_argnames=("batch_tile", "return_padded"))
def simple_linear_forward(x, w1_prepped, w2_prepped, *,
                          batch_tile=None, return_padded=False):
    """x: (B, 1, 28, 28) / (B, 28, 28) / (B, 784), float32 or bfloat16.
       w1_prepped / w2_prepped: outputs of prepare_weights().
       return_padded=True returns the lane-dense (B,128) output (cols 10..127 are
       exact zeros) and skips the post-kernel slice."""
    B = x.shape[0]
    x_flat = x.reshape(B, -1)                                  # Flatten(1); reshape is free
    assert x_flat.shape[1] == IN_FEATURES
    if x_flat.dtype != jnp.bfloat16 and x_flat.dtype != jnp.float32:
        x_flat = x_flat.astype(jnp.float32)

    x_itemsize = x_flat.dtype.itemsize
    out_dtype = jnp.float32
    cost = _cost_estimate(B, x_itemsize, jnp.dtype(out_dtype).itemsize)
    vmem_spec = pl.BlockSpec(memory_space=pltpu.MemorySpace.VMEM)

    if B <= _SINGLE_BLOCK_MAX_B:
        # Tiny batch: single full-array VMEM block, no grid machinery.
        out = pl.pallas_call(
            _mlp_kernel,
            out_shape=jax.ShapeDtypeStruct((B, PADDED_OUT), out_dtype),
            in_specs=[vmem_spec, vmem_spec, vmem_spec],
            out_specs=vmem_spec,
            cost_estimate=cost,
        )(x_flat, w1_prepped, w2_prepped)
    else:
        tile = batch_tile if batch_tile is not None else _pick_batch_tile(B, x_itemsize)
        tile = max(8, (min(int(tile), B) // 8) * 8)
        grid = (pl.cdiv(B, tile),)          # partial last block handled by Pallas masking
        per_row = _per_row_vmem_bytes(x_itemsize)
        vmem_limit = int(tile * per_row * 1.25) + (2 << 20)   # + weights & slack
        vmem_limit = max(vmem_limit, 32 << 20)
        vmem_limit = min(vmem_limit, _vmem_capacity_bytes())
        out = pl.pallas_call(
            _mlp_kernel,
            out_shape=jax.ShapeDtypeStruct((B, PADDED_OUT), out_dtype),
            grid=grid,
            in_specs=[
                pl.BlockSpec((tile, IN_FEATURES), lambda i: (i, 0)),
                pl.BlockSpec((IN_FEATURES, HIDDEN), lambda i: (0, 0)),
                pl.BlockSpec((HIDDEN, PADDED_OUT), lambda i: (0, 0)),
            ],
            out_specs=pl.BlockSpec((tile, PADDED_OUT), lambda i: (i, 0)),
            compiler_params=pltpu.CompilerParams(
                dimension_semantics=("parallel",),
                vmem_limit_bytes=vmem_limit),
            cost_estimate=cost,
        )(x_flat, w1_prepped, w2_prepped)

    if return_padded:
        return out                           # (B, 128); cols 10..127 are exact zeros
    return out[:, :OUT_FEATURES]             # (B, 10), matches the PyTorch module


def _reference(x, w1, w2):
    x_flat = x.reshape(x.shape[0], -1).astype(jnp.float32)
    h = jnp.maximum(x_flat @ w1.T, 0.0)
    return h @ w2.T


if __name__ == "__main__":
    key = jax.random.PRNGKey(0)
    k_x, k_w1, k_w2, k_x2 = jax.random.split(key, 4)

    # Deterministic weight init (kaiming-uniform-like scale), PyTorch (out,in) layout.
    bound1 = 1.0 / (IN_FEATURES ** 0.5)
    bound2 = 1.0 / (HIDDEN ** 0.5)
    w1 = jax.random.uniform(k_w1, (HIDDEN, IN_FEATURES),
                            minval=-bound1, maxval=bound1, dtype=jnp.float32)
    w2 = jax.random.uniform(k_w2, (OUT_FEATURES, HIDDEN),
                            minval=-bound2, maxval=bound2, dtype=jnp.float32)

    # TODO(synk): ModelHook only registers forward hooks for introspection; it does
    # not change forward semantics, so it has no kernel-side equivalent.

    # One-time weight prep (transpose + pad + bf16), outside the forward path.
    w1_p, w2_p = jax.block_until_ready(prepare_weights(w1, w2))

    # --- small batch: single full-array VMEM block ---
    B = 8
    x = jax.random.normal(k_x, (B, 1, 28, 28), dtype=jnp.float32)   # MNIST-like NCHW
    out = jax.block_until_ready(simple_linear_forward(x, w1_p, w2_p))
    ref = _reference(x, w1, w2)
    assert out.shape == (B, OUT_FEATURES)
    # bf16 matmuls with f32 accumulation -> loosened tolerance vs the f32 reference.
    assert jnp.allclose(out, ref, atol=5e-2, rtol=5e-2), \
        float(jnp.max(jnp.abs(out - ref)))

    # --- medium batch, NOT divisible by the auto tile: tiled "parallel" grid,
    #     >= 2 steps, partial last block handled by Pallas masking ---
    B2 = 600
    x2 = jax.random.normal(k_x2, (B2, 1, 28, 28), dtype=jnp.float32)
    out2 = jax.block_until_ready(simple_linear_forward(x2, w1_p, w2_p))
    ref2 = _reference(x2, w1, w2)
    assert out2.shape == (B2, OUT_FEATURES)
    assert jnp.allclose(out2, ref2, atol=5e-2, rtol=5e-2), \
        float(jnp.max(jnp.abs(out2 - ref2)))

    # --- padded-output path (no post-kernel slice; cols 10..127 are zeros) ---
    out2_pad = jax.block_until_ready(
        simple_linear_forward(x2, w1_p, w2_p, return_padded=True))
    assert out2_pad.shape == (B2, PADDED_OUT)
    assert jnp.allclose(out2_pad[:, :OUT_FEATURES], ref2, atol=5e-2, rtol=5e-2)
    assert jnp.allclose(out2_pad[:, OUT_FEATURES:], 0.0)

    # --- bf16 activations accepted directly (in-kernel cast becomes a no-op) ---
    out2_bf = jax.block_until_ready(
        simple_linear_forward(x2.astype(jnp.bfloat16), w1_p, w2_p))
    assert out2_bf.shape == (B2, OUT_FEATURES)
    assert jnp.allclose(out2_bf, ref2, atol=1e-1, rtol=1e-1), \
        float(jnp.max(jnp.abs(out2_bf - ref2)))

    print("KERNEL_OK")
</pallas_src>

<mosaic_0001>
module attributes {stable_mosaic.version = 11 : i64} {
  func.func @_mlp_kernel(%arg0: memref<8x784xf32, #tpu.memory_space<vmem>>, %arg1: memref<784x128xbf16, #tpu.memory_space<vmem>>, %arg2: memref<128x128xbf16, #tpu.memory_space<vmem>>, %arg3: memref<8x128xf32, #tpu.memory_space<vmem>>) attributes {dimension_semantics = [], scalar_prefetch = 0 : i64, scratch_operands = 0 : i64, tpu.core_type = #tpu.core_type<tc>} {
    %c0 = arith.constant 0 : index
    %c0_0 = arith.constant 0 : index
    %0 = vector.load %arg0[%c0, %c0_0] : memref<8x784xf32, #tpu.memory_space<vmem>>, vector<8x784xf32>
    %1 = arith.truncf %0 : vector<8x784xf32> to vector<8x784xbf16>
    %c0_1 = arith.constant 0 : index
    %c0_2 = arith.constant 0 : index
    %2 = vector.load %arg1[%c0_1, %c0_2] : memref<784x128xbf16, #tpu.memory_space<vmem>>, vector<784x128xbf16>
    %cst = arith.constant dense<0.000000e+00> : vector<8x128xf32>
    %3 = tpu.matmul %1, %2, %cst {dimension_numbers = #tpu.dot_dimension_numbers<[1], [0], [0], [1], [0, 0, 1, 1], [], []>} : vector<8x784xbf16>, vector<784x128xbf16>, vector<8x128xf32> -> vector<8x128xf32>
    %cst_3 = arith.constant 0.000000e+00 : f32
    %4 = vector.broadcast %cst_3 : f32 to vector<8x128xf32>
    %5 = arith.maximumf %3, %4 : vector<8x128xf32>
    %6 = arith.truncf %5 : vector<8x128xf32> to vector<8x128xbf16>
    %c0_4 = arith.constant 0 : index
    %c0_5 = arith.constant 0 : index
    %7 = vector.load %arg2[%c0_4, %c0_5] : memref<128x128xbf16, #tpu.memory_space<vmem>>, vector<128x128xbf16>
    %cst_6 = arith.constant dense<0.000000e+00> : vector<8x128xf32>
    %8 = tpu.matmul %6, %7, %cst_6 {dimension_numbers = #tpu.dot_dimension_numbers<[1], [0], [0], [1], [0, 0, 1, 1], [], []>} : vector<8x128xbf16>, vector<128x128xbf16>, vector<8x128xf32> -> vector<8x128xf32>
    %c0_7 = arith.constant 0 : index
    %c0_8 = arith.constant 0 : index
    %9 = vector.load %arg3[%c0_7, %c0_8] : memref<8x128xf32, #tpu.memory_space<vmem>>, vector<8x128xf32>
    tpu.vector_store %arg3[%c0_7, %c0_8], %8 {strides = array<i32>} : memref<8x128xf32, #tpu.memory_space<vmem>>, vector<8x128xf32>,
    return
  }
}

</mosaic_0001>

<bundles_post_ra>
// kernel: simple_linear_forward.1
= control target key start
LH: loop header
LB: loop body
LE: loop exit
PB: predicated region body
PF: predicated region fallthrough
CT: control target
= control target key end

     0   :  { %v952_v41 = vmov 0.0   ;;  %vm953_vm0 = vmmov 0   ;;  %vm422_vm1 = vcmask 130048   ;;  %s1192_s0 = inlined_call_operand.vmem [shape: f32[8,784], index: 0, kind: input, shape index: {}]   ;;  %s1193_s1 = inlined_call_operand.vmem [shape: bf16[784,128], index: 1, kind: input, shape index: {}]   ;;  %s1194_s2 = inlined_call_operand.vmem [shape: bf16[128,128], index: 2, kind: input, shape index: {}]   ;;  %s1195_s3 = inlined_call_operand.hbm [shape: f32[8,128], index: 3, kind: output, shape index: {}]  }
   0x1   :  { %v871_v0 = vld [vmem:[%s1193_s1 + $0x40] sm:$0xff]   ;;  %v875_v4 = vld [vmem:[%s1193_s1 + $0x48] sm:$0xff]   ;;  %v879_v8 = vld [vmem:[%s1193_s1 + $0x50] sm:$0xff]  }
   0x2   :  { %v872_v1 = vld [vmem:[%s1193_s1 + $0xc0] sm:$0xff]   ;;  %765 = vmatprep.subr.bf16.mxu0 %v871_v0  ;;  %v876_v5 = vld [vmem:[%s1193_s1 + $0xc8] sm:$0xff]   ;;  %v880_v9 = vld [vmem:[%s1193_s1 + $0xd0] sm:$0xff]  }
   0x3   :  { %v873_v2 = vld [vmem:[%s1193_s1] sm:$0xff]   ;;  %787 = vmatprep.subr.bf16.mxu1 %v872_v1  ;;  %v877_v6 = vld [vmem:[%s1193_s1 + $0x8] sm:$0xff]   ;;  %v881_v10 = vld [vmem:[%s1193_s1 + $0x10] sm:$0xff]  }
   0x4   :  { %v874_v3 = vld [vmem:[%s1193_s1 + $0x80] sm:$0xff]   ;;  %766 = vmatpush3.bf16.msra.mxu0 %v873_v2  ;;  %v878_v7 = vld [vmem:[%s1193_s1 + $0x88] sm:$0xff]   ;;  %v882_v11 = vld [vmem:[%s1193_s1 + $0x90] sm:$0xff]  }
   0x5   :  { %788 = vmatpush3.bf16.msra.mxu1 %v874_v3  ;;  %767 = vmatprep.subr.bf16.mxu0 %v875_v4  ;;  %v883_v12 = vld [vmem:[%s1193_s1 + $0x58] sm:$0xff]   ;;  %v887_v16 = vld [vmem:[%s1193_s1 + $0x60] sm:$0xff]   ;;  %v891_v20 = vld [vmem:[%s1193_s1 + $0x68] sm:$0xff]  }
   0x6   :  { %789 = vmatprep.subr.bf16.mxu1 %v876_v5  ;;  %v884_v13 = vld [vmem:[%s1193_s1 + $0xd8] sm:$0xff]   ;;  %v888_v17 = vld [vmem:[%s1193_s1 + $0xe0] sm:$0xff]   ;;  %v892_v21 = vld [vmem:[%s1193_s1 + $0xe8] sm:$0xff]  }
   0x7   :  { %v885_v14 = vld [vmem:[%s1193_s1 + $0x18] sm:$0xff]   ;;  %v889_v18 = vld [vmem:[%s1193_s1 + $0x20] sm:$0xff]   ;;  %v893_v22 = vld [vmem:[%s1193_s1 + $0x28] sm:$0xff]  }
   0x8   :  { %768 = vmatpush3.bf16.msra.mxu0 %v877_v6  ;;  %v886_v15 = vld [vmem:[%s1193_s1 + $0x98] sm:$0xff]   ;;  %v890_v19 = vld [vmem:[%s1193_s1 + $0xa0] sm:$0xff]   ;;  %v894_v23 = vld [vmem:[%s1193_s1 + $0xa8] sm:$0xff]  }
   0x9   :  { %790 = vmatpush3.bf16.msra.mxu1 %v878_v7  ;;  %769 = vmatprep.subr.bf16.mxu0 %v879_v8  ;;  %v895_v24 = vld [vmem:[%s1193_s1 + $0x70] sm:$0xff]   ;;  %v899_v28 = vld [vmem:[%s1193_s1 + $0x78] sm:$0xff]   ;;  %v17_v32 = vld [vmem:[%s1192_s0 + $0x8] sm:$0xff] }
   0xa   :  { %791 = vmatprep.subr.bf16.mxu1 %v880_v9  ;;  %v896_v25 = vld [vmem:[%s1193_s1 + $0xf0] sm:$0xff]   ;;  %v900_v29 = vld [vmem:[%s1193_s1 + $0xf8] sm:$0xff]   ;;  %v16_v34 = vld [vmem:[%s1192_s0] sm:$0xff]  ;;  %v24_v35 = vpack.c.bf16 %v17_v32, %v17_v32 }
   0xb   :  { %v897_v26 = vld [vmem:[%s1193_s1 + $0x30] sm:$0xff]   ;;  %v901_v30 = vld [vmem:[%s1193_s1 + $0x38] sm:$0xff]   ;;  %v23_v37 = vpack.c.bf16 %v16_v34, %v16_v34  ;;  %v903_v40 = vld [vmem:[%s1193_s1 + $0x140] sm:$0xff]  }
   0xc   :  { %770 = vmatpush3.bf16.msra.mxu0 %v881_v10  ;;  %v898_v27 = vld [vmem:[%s1193_s1 + $0xb0] sm:$0xff]   ;;  %v902_v31 = vld [vmem:[%s1193_s1 + $0xb8] sm:$0xff]   ;;  %458 = vmatprep.mubr.bf16.mxu0 %v24_v35  ;;  %v904_v42 = vld [vmem:[%s1193_s1 + $0x100] sm:$0xff]  }
   0xd   :  { %792 = vmatpush3.bf16.msra.mxu1 %v882_v11  ;;  %771 = vmatprep.subr.bf16.mxu0 %v883_v12  ;;  %v19_v33 = vld [vmem:[%s1192_s0 + $0x18] sm:$0xff]  ;;  %v18_v38 = vld [vmem:[%s1192_s0 + $0x10] sm:$0xff]  ;;  %v905_v43 = vld [vmem:[%s1193_s1 + $0x148] sm:$0xff]  }
   0xe   :  { %793 = vmatprep.subr.bf16.mxu1 %v884_v13  ;;  %v26_v36 = vpack.c.bf16 %v19_v33, %v19_v33  ;;  %v25_v39 = vpack.c.bf16 %v18_v38, %v18_v38  ;;  %v906_v44 = vld [vmem:[%s1193_s1 + $0x108] sm:$0xff]   ;;  %v907_v45 = vld [vmem:[%s1193_s1 + $0x150] sm:$0xff]   ;;  %v909_v47 = vld [vmem:[%s1193_s1 + $0x158] sm:$0xff]  }
   0xf   :  { %v908_v46 = vld [vmem:[%s1193_s1 + $0x110] sm:$0xff]   ;;  %v910_v48 = vld [vmem:[%s1193_s1 + $0x118] sm:$0xff]   ;;  %v911_v49 = vld [vmem:[%s1193_s1 + $0x160] sm:$0xff]  }
  0x10   :  { %772 = vmatpush3.bf16.msra.mxu0 %v885_v14  ;;  %498 = vmatprep.mubr.bf16.mxu1 %v26_v36  ;;  %v912_v50 = vld [vmem:[%s1193_s1 + $0x120] sm:$0xff]   ;;  %v913_v51 = vld [vmem:[%s1193_s1 + $0x168] sm:$0xff]   ;;  %v22_v55 = vld [vmem:[%s1192_s0 + $0x30] sm:$0xff] }
  0x11   :  { %794 = vmatpush3.bf16.msra.mxu1 %v886_v15  ;;  %773 = vmatprep.subr.bf16.mxu0 %v887_v16  ;;  %v919_v52 = vld [vmem:[%s1193_s1 + $0x180] sm:$0xff]   ;;  %v21_v53 = vld [vmem:[%s1192_s0 + $0x28] sm:$0xff]  ;;  %v29_v57 = vpack.c.bf16 %v22_v55, %v22_v55  ;;  %v915_v58 = vld [vmem:[%s1193_s1 + $0x170] sm:$0xff]  }
  0x12   :  { %795 = vmatprep.subr.bf16.mxu1 %v888_v17  ;;  %v28_v54 = vpack.c.bf16 %v21_v53, %v21_v53  ;;  %v914_v56 = vld [vmem:[%s1193_s1 + $0x128] sm:$0xff]  }
  0x14   :  { %774 = vmatpush3.bf16.msra.mxu0 %v889_v18 }
  0x15   :  { %796 = vmatpush3.bf16.msra.mxu1 %v890_v19  ;;  %775 = vmatprep.subr.bf16.mxu0 %v891_v20 }
  0x16   :  { %797 = vmatprep.subr.bf16.mxu1 %v892_v21 }
  0x18   :  { %776 = vmatpush3.bf16.msra.mxu0 %v893_v22 }
  0x19   :  { %798 = vmatpush3.bf16.msra.mxu1 %v894_v23  ;;  %777 = vmatprep.subr.bf16.mxu0 %v895_v24 }
  0x1a   :  { %799 = vmatprep.subr.bf16.mxu1 %v896_v25 }
  0x1c   :  { %778 = vmatpush3.bf16.msra.mxu0 %v897_v26 }
  0x1d   :  { %800 = vmatpush3.bf16.msra.mxu1 %v898_v27  ;;  %779 = vmatprep.subr.bf16.mxu0 %v899_v28 }
  0x1e   :  { %801 = vmatprep.subr.bf16.mxu1 %v900_v29 }
  0x20   :  { %780 = vmatpush3.bf16.msra.mxu0 %v901_v30 }
  0x21   :  { %802 = vmatpush3.bf16.msra.mxu1 %v902_v31  ;;  %809 = vmatprep.subr.bf16.mxu0 %v903_v40 }
  0x22   :  { %842 = vmatprep.subr.bf16.mxu1 %v952_v41 }
  0x23   :  { %459 = vmatmul.mubr.bf16.vlgmr.msra.gmra.mrb[0].mxu0 %v23_v37 }
  0x24   :  { %499 = vmatmul.mubr.bf16.vlgmr.msra.gmra.mrb[0].mxu1 %v25_v39  ;;  %810 = vmatpush3.bf16.msra.mxu0 %v904_v42 }
  0x25   :  { %844 = vmatprep.mubr.msk.bf16.mxu1 %vm953_vm0, %v952_v41  ;;  %811 = vmatprep.subr.bf16.mxu0 %v905_v43 }
  0x26   :  { %843 = vmatpush3.bf16.msra.mxu1 %v919_v52  ;;  %538 = vmatprep.mubr.bf16.mxu0 %v28_v54 }
  0x27   :  { %848 = vmatprep.subr.bf16.mxu1 %v952_v41 }
  0x28   :  { %812 = vmatpush3.bf16.msra.mxu0 %v906_v44 }
  0x29   :  { %813 = vmatprep.subr.bf16.mxu0 %v907_v45 }
  0x2c   :  { %814 = vmatpush3.bf16.msra.mxu0 %v908_v46  ;;  %845 = vmatmul.mubr.msk.bf16.vlgmr.msra.gmra.mrb[4].mxu1 %vm422_vm1, %v29_v57 }
  0x2d   :  { %815 = vmatprep.subr.bf16.mxu0 %v909_v47  ;;  %864 = vmatprep.mubr.msk.bf16.mxu1 %vm953_vm0, %v952_v41 }
  0x30   :  { %816 = vmatpush3.bf16.msra.mxu0 %v910_v48 }
  0x31   :  { %817 = vmatprep.subr.bf16.mxu0 %v911_v49 }
  0x34   :  { %818 = vmatpush3.bf16.msra.mxu0 %v912_v50 }
  0x35   :  { %819 = vmatprep.subr.bf16.mxu0 %v913_v51 }
  0x36   :  { %8 = vsyncpa [#allocation3], 0  ;;  %v916_v59 = vld [vmem:[%s1193_s1 + $0x130] sm:$0xff]   ;;  %v917_v60 = vld [vmem:[%s1193_s1 + $0x178] sm:$0xff]  }
  0x37   :  { %v918_v61 = vld [vmem:[%s1193_s1 + $0x138] sm:$0xff]   ;;  %v20_v62 = vld [vmem:[%s1192_s0 + $0x20] sm:$0xff]  ;;  %v921_v1 = vld [vmem:[%s1194_s2 + $0x8] sm:$0xff]  }
  0x38   :  { %820 = vmatpush3.bf16.msra.mxu0 %v914_v56  ;;  %v27_v63 = vpack.c.bf16 %v20_v62, %v20_v62  ;;  %v920_v0 = vld [vmem:[%s1194_s2] sm:$0xff]   ;;  %v922_v2 = vld [vmem:[%s1194_s2 + $0x10] sm:$0xff]   ;;  %v923_v3 = vld [vmem:[%s1194_s2 + $0x18] sm:$0xff]  }
  0x39   :  { %821 = vmatprep.subr.bf16.mxu0 %v915_v58  ;;  %849 = vmatpush3.bf16.msra.mxu1 %v920_v0  ;;  %v924_v4 = vld [vmem:[%s1194_s2 + $0x20] sm:$0xff]   ;;  %v925_v5 = vld [vmem:[%s1194_s2 + $0x28] sm:$0xff]   ;;  %v926_v6 = vld [vmem:[%s1194_s2 + $0x30] sm:$0xff]  }
  0x3a   :  { %850 = vmatprep.subr.bf16.mxu1 %v952_v41  ;;  %v927_v7 = vld [vmem:[%s1194_s2 + $0x38] sm:$0xff]   ;;  %s954_s2 = smov [#allocation2]  }
  0x3b   :  { %s699_s30 = sshll.u32 %s954_s2, 4  ;;  %s700_s30 = int_to_ptr.vmem [resolvable:$true] %s699_s30 }
  0x3c   :  { %822 = vmatpush3.bf16.msra.mxu0 %v916_v59  ;;  %s928_s4 = scalar_lea.vmem %s700_s30, 128  ;;  %p933_p1 = scmp.lt.s32.totalorder %s700_s30, %s700_s30 }
  0x3d   :  { %823 = vmatprep.subr.bf16.mxu0 %v917_v60  ;;  %851 = vmatpush3.bf16.msra.mxu1 %v921_v1  ;;  %p929_p0 = scmp.ne.s32.totalorder %s700_s30, %s928_s4  ;;  %p934_p2 = scmp.lt.s32.totalorder %s928_s4, %s928_s4 }
  0x3e   :  { %852 = vmatprep.subr.bf16.mxu1 %v952_v41 }
  0x3f   :  { %p935_p3 = por %p934_p2, %p933_p1 }
  0x40   :  { %824 = vmatpush3.bf16.msra.mxu0 %v918_v61 }
  0x41   :  { %853 = vmatpush3.bf16.msra.mxu1 %v922_v2  ;;  %p936_p4 = pnand %p935_p3, %p929_p0 }
  0x42   :  { %854 = vmatprep.subr.bf16.mxu1 %v952_v41 }
  0x43   :  { %539 = vmatmul.mubr.bf16.vlgmr.msra.gmra.mrb[4].mxu0 %v27_v63 }
  0x45   :  { %855 = vmatpush3.bf16.msra.mxu1 %v923_v3 }
  0x46   :  { %856 = vmatprep.subr.bf16.mxu1 %v952_v41 }
  0x49   :  { %857 = vmatpush3.bf16.msra.mxu1 %v924_v4 }
  0x4a   :  { %858 = vmatprep.subr.bf16.mxu1 %v952_v41 }
  0x4d   :  { %859 = vmatpush3.bf16.msra.mxu1 %v925_v5 }
  0x4e   :  { %860 = vmatprep.subr.bf16.mxu1 %v952_v41 }
  0x51   :  { %861 = vmatpush3.bf16.msra.mxu1 %v926_v6 }
  0x52   :  { %862 = vmatprep.subr.bf16.mxu1 %v952_v41 }
  0x55   :  { %863 = vmatpush3.bf16.msra.mxu1 %v927_v7 }
  0xf6   :  { %v781_v8 = vpop.f32.mrb[0].mxu0 }
  0xf7   :  { %v803_v9 = vpop.f32.mrb[0].mxu1  ;;  %v782_v10 = vpop.f32.mrb[1].mxu0 }
  0xf8   :  { %v804_v11 = vpop.f32.mrb[1].mxu1  ;;  %v783_v12 = vadd.f32 %v782_v10, %v781_v8  ;;  %v784_v14 = vpop.f32.mrb[2].mxu0 }
  0xf9   :  { %v805_v13 = vadd.f32 %v804_v11, %v803_v9  ;;  %v806_v15 = vpop.f32.mrb[2].mxu1  ;;  %v785_v16 = vpop.f32.mrb[3].mxu0 }
  0xfa   :  { %v807_v17 = vpop.f32.mrb[3].mxu1 }
  0xfb   :  { %v501_v18 = vadd.f32 %v805_v13, %v783_v12 }
  0xff   :  { %v580_v19 = vpop.f32.mrb[4].mxu1 }
 0x100   :  { %v846_v20 = vpop.f32.mrb[5].mxu1 }
 0x101   :  { %v583_v21 = vpop.f32.mrb[6].mxu1 }
 0x102   :  { %v847_v22 = vpop.f32.mrb[7].mxu1 }
 0x116   :  { %v825_v23 = vpop.f32.mrb[4].mxu0 }
 0x117   :  { %v826_v24 = vpop.f32.mrb[5].mxu0 }
 0x118   :  { %v827_v25 = vadd.f32 %v826_v24, %v825_v23  ;;  %v828_v26 = vpop.f32.mrb[6].mxu0 }
 0x119   :  { %v829_v27 = vpop.f32.mrb[7].mxu0 }
 0x11a   :  { %v541_v28 = vadd.f32 %v827_v25, %v501_v18 }
 0x11c   :  { %v581_v29 = vadd.f32 %v580_v19, %v541_v28 }
 0x11e   :  { %v586_v30 = vmax.f32 %v581_v29, 0.0 }
 0x120   :  { %v587_v31 = vpack.c.bf16 %v586_v30, %v586_v30 }
 0x122   :  { %865 = vmatmul.mubr.bf16.vlgmr.msra.gmra.mrb[8].mxu1 %v587_v31 }
 0x1f5   :  { %v686_v32 = vpop.f32.mrb[8].mxu1 }
 0x1f6   :  { %692 = vst [vmem:[#allocation2] sm:$0xff] %v686_v32  ;;  %v866_v33 = vpop.f32.mrb[9].mxu1 }
 0x1f7   :  { %v689_v34 = vpop.f32.mrb[10].mxu1 }
 0x1f8   :  { %939 = shalt.err (!%p936_p4)
}
 0x1f9   :  { %s940_s7 = scalar_lea.hbm %s1195_s3, 128 }
 0x1fa   :  { %p941_p5 = scmp.ne.s32.totalorder %s1195_s3, %s940_s7  ;;  %p944_p6 = scmp.lt.u32.totalorder %s940_s7, %s1195_s3 }
 0x1fc   :  { %p946_p7 = pnand %p944_p6, %p941_p5 }
 0x1fe   :  { %949 = shalt.err (!%p946_p7)
}
 0x1ff   :  { %702 = dma.vmem_to_hbm [thread:$0]  %s700_s30, 128, %s1195_s3, [#allocation3]   ;;  %v867_v35 = vpop.f32.mrb[11].mxu1 }
 0x200   :  { %950 = dma.done.wait [#allocation3], 128  }
 0x201   :  { %951 = vsyncadd [#allocation3], 4294967168 }
 0x202   :  { %706 = vsyncpa [#allocation3], 1 }

</bundles_post_ra>
